<compile_context>
chip_gen: v7x
topology: tpu7x:2x2x1
jax: 0.10.0
libtpu: 0.0.40
codegen_flags: <defaults>
</compile_context>

<pallas_src>
import functools

import jax
import jax.numpy as jnp
from jax.experimental import pallas as pl


# ----------------------------- in-kernel helpers -----------------------------

def _layer_norm(x, gamma, beta, eps=1e-5):
    # One-pass statistics: mean and E[x^2] are independent lane reductions,
    # halving the dependent cross-lane (XLU) chain vs. the two-pass formula.
    mean = jnp.mean(x, axis=-1, keepdims=True)
    mean_sq = jnp.mean(x * x, axis=-1, keepdims=True)
    var = mean_sq - mean * mean
    return (x - mean) * jax.lax.rsqrt(var + eps) * gamma + beta


def _collapsed_attention(seq, Wv, Wo, bo):
    # Exact value of SelfAttention(values=seq, keys=*, queries=*) under the
    # reference einsum: every output row is sum_over_seq(seq @ Wv) @ Wo + bo.
    # The row-sum commutes with Wo, so both matmuls run at the MXU-friendly
    # (L, E) shape and a single sublane reduction follows.
    t = jnp.dot(jnp.dot(seq, Wv, preferred_element_type=jnp.float32), Wo,
                preferred_element_type=jnp.float32)
    return jnp.sum(t, axis=0, keepdims=True) + bo          # (1, E)


# --------------------------------- the kernel --------------------------------

def decoder_block_kernel(
    x_ref, vals_ref,
    Wv1_ref, Wo1_ref,          # decoder self-attention (live weights only)
    Wv2_ref, Wo2_ref,          # transformer-block attention
    Wf1_ref, Wf2_ref,          # feed-forward
    vecs_ref,                  # (9, E) packed: bo1,g0,b0, bo2,g1,b1, bf2,g2,b2
    bf1_ref,                   # (1, F)
    out_ref,
    *, n_batch,
):
    # Shared parameters, loaded once for the whole batch.
    Wv1 = Wv1_ref[...]; Wo1 = Wo1_ref[...]
    Wv2 = Wv2_ref[...]; Wo2 = Wo2_ref[...]
    Wf1 = Wf1_ref[...]; Wf2 = Wf2_ref[...]
    bf1 = bf1_ref[...]
    vecs = vecs_ref[...]
    bo1, g0, b0 = vecs[0:1], vecs[1:2], vecs[2:3]
    bo2, g1, b1 = vecs[3:4], vecs[4:5], vecs[5:6]
    bf2, g2, b2 = vecs[6:7], vecs[7:8], vecs[8:9]

    # Whole batch in a single grid-less invocation: at this size the
    # ~0.35 us/step pipeline overhead of a batch grid exceeds the compute.
    # The tiny batch loop is a static unroll.
    for n in range(n_batch):
        x = x_ref[n]          # (Lq, E)
        vals = vals_ref[n]    # (Lv, E)

        # --- DecoderBlock: SelfAttention(x, x, x) + residual + LayerNorm ---
        a1 = _collapsed_attention(x, Wv1, Wo1, bo1)        # (1, E)
        queries = _layer_norm(a1 + x, g0, b0)              # (Lq, E)
        # dropout -> identity (eval)

        # --- TransformerBlock: SelfAttention(values, keys, queries) ---
        #     (keys and the Q/K projections never reach the output)
        a2 = _collapsed_attention(vals, Wv2, Wo2, bo2)     # (1, E)
        skip = _layer_norm(a2 + queries, g1, b1)           # (Lq, E)
        # dropout -> identity (eval)

        # --- feed-forward + residual + LayerNorm ---
        hidden = jnp.maximum(
            jnp.dot(skip, Wf1, preferred_element_type=jnp.float32) + bf1, 0.0)
        ff = jnp.dot(hidden, Wf2, preferred_element_type=jnp.float32) + bf2
        out_ref[n] = _layer_norm(ff + skip, g2, b2)
        # dropout -> identity (eval)


# --------------------------------- wrapper -----------------------------------

def decoder_block(x, values, keys, params, *, embed, heads):
    """Forward pass of DecoderBlock.

    `params` keeps the full 20-array layout of the PyTorch module; arrays that
    cannot influence the output under the reference einsum (the `keys` input
    and the Wk/Wq projections of both attentions) are dropped before the
    pallas_call so no dead bytes are DMA'd or computed on.
    """
    del heads, keys  # dead under 'nhqk,nvhd->nqhd' (see module-level note)
    (Wv1, _Wk1, _Wq1, Wo1, bo1, g0, b0,
     Wv2, _Wk2, _Wq2, Wo2, bo2, g1, b1,
     Wf1, bf1, Wf2, bf2, g2, b2) = params

    N, Lq, E = x.shape
    assert E == embed

    # Pack the nine (1, E) bias / LayerNorm vectors into one VMEM slab.
    vecs = jnp.concatenate([bo1, g0, b0, bo2, g1, b1, bf2, g2, b2], axis=0)

    kernel = functools.partial(decoder_block_kernel, n_batch=N)

    # No grid: full operands live in VMEM for a single kernel invocation
    # (well under the VMEM budget of any TPU generation at these sizes).
    return pl.pallas_call(
        kernel,
        out_shape=jax.ShapeDtypeStruct((N, Lq, E), jnp.float32),
    )(x, values, Wv1, Wo1, Wv2, Wo2, Wf1, Wf2, vecs, bf1)


# ------------------------- pure-JAX reference (check) -------------------------
# Faithful mirror of the PyTorch module (full Q/K projections, softmax and the
# original einsum) so the algebraic simplification in the kernel is verified.

def _ref_attention(v, k, q, Wv, Wk, Wq, Wo, bo, heads, head_dim, embed):
    N, Lq, E = q.shape
    vp = (v @ Wv).reshape(N, -1, heads, head_dim)
    kp = (k @ Wk).reshape(N, -1, heads, head_dim)
    qp = (q @ Wq).reshape(N, Lq, heads, head_dim)
    energy = jnp.einsum('nqhd,nkhd->nhqk', qp, kp)
    attn = jax.nn.softmax(energy / (embed ** 0.5), axis=3)
    out = jnp.einsum('nhqk,nvhd->nqhd', attn, vp).reshape(N, Lq, E)
    return out @ Wo + bo


def _ref_ln(x, g, b, eps=1e-5):
    m = x.mean(-1, keepdims=True)
    v = ((x - m) ** 2).mean(-1, keepdims=True)
    return (x - m) / jnp.sqrt(v + eps) * g + b


def decoder_block_ref(x, values, keys, params, *, embed, heads):
    (Wv1, Wk1, Wq1, Wo1, bo1, g0, b0,
     Wv2, Wk2, Wq2, Wo2, bo2, g1, b1,
     Wf1, bf1, Wf2, bf2, g2, b2) = params
    hd = embed // heads
    a1 = _ref_attention(x, x, x, Wv1, Wk1, Wq1, Wo1, bo1, heads, hd, embed)
    q = _ref_ln(a1 + x, g0, b0)
    a2 = _ref_attention(values, keys, q, Wv2, Wk2, Wq2, Wo2, bo2, heads, hd, embed)
    skip = _ref_ln(a2 + q, g1, b1)
    ff = jnp.maximum(skip @ Wf1 + bf1, 0.0) @ Wf2 + bf2
    return _ref_ln(ff + skip, g2, b2)


# ----------------------------------- main -------------------------------------

if __name__ == "__main__":
    EMBED = 32
    HEADS = 4
    FWD_EXP = 2
    N, LQ, LV, LK = 2, 8, 8, 8

    key = jax.random.PRNGKey(0)
    k_in, k_par = jax.random.split(key)

    kx, kv, kk = jax.random.split(k_in, 3)
    x = jax.random.normal(kx, (N, LQ, EMBED), dtype=jnp.float32)
    values = jax.random.normal(kv, (N, LV, EMBED), dtype=jnp.float32)
    keys = jax.random.normal(kk, (N, LK, EMBED), dtype=jnp.float32)

    def linear_w(k, fan_in, fan_out):
        return 0.05 * jax.random.normal(k, (fan_in, fan_out), dtype=jnp.float32)

    pk = jax.random.split(k_par, 16)
    E, F = EMBED, FWD_EXP * EMBED
    params = (
        # attention #1 (Wv, Wk, Wq, Wo, bo)
        linear_w(pk[0], E, E), linear_w(pk[1], E, E), linear_w(pk[2], E, E),
        linear_w(pk[3], E, E),
        0.01 * jax.random.normal(pk[4], (1, E), dtype=jnp.float32),
        # decoder LayerNorm
        jnp.ones((1, E), jnp.float32), jnp.zeros((1, E), jnp.float32),
        # attention #2 (Wv, Wk, Wq, Wo, bo)
        linear_w(pk[5], E, E), linear_w(pk[6], E, E), linear_w(pk[7], E, E),
        linear_w(pk[8], E, E),
        0.01 * jax.random.normal(pk[9], (1, E), dtype=jnp.float32),
        # norm1
        jnp.ones((1, E), jnp.float32), jnp.zeros((1, E), jnp.float32),
        # feed-forward
        linear_w(pk[10], E, F),
        0.01 * jax.random.normal(pk[11], (1, F), dtype=jnp.float32),
        linear_w(pk[12], F, E),
        0.01 * jax.random.normal(pk[13], (1, E), dtype=jnp.float32),
        # norm2
        jnp.ones((1, E), jnp.float32), jnp.zeros((1, E), jnp.float32),
    )

    out = decoder_block(x, values, keys, params, embed=EMBED, heads=HEADS)
    out = jax.block_until_ready(out)

    ref = decoder_block_ref(x, values, keys, params, embed=EMBED, heads=HEADS)
    assert out.shape == (N, LQ, EMBED)
    assert jnp.allclose(out, ref, atol=1e-4, rtol=1e-4), float(
        jnp.max(jnp.abs(out - ref)))

    print("KERNEL_OK")
</pallas_src>

<mosaic_0001>
module attributes {stable_mosaic.version = 11 : i64} {
  func.func @decoder_block_kernel(%arg0: memref<2x8x32xf32, #tpu.memory_space<vmem>>, %arg1: memref<2x8x32xf32, #tpu.memory_space<vmem>>, %arg2: memref<32x32xf32, #tpu.memory_space<vmem>>, %arg3: memref<32x32xf32, #tpu.memory_space<vmem>>, %arg4: memref<32x32xf32, #tpu.memory_space<vmem>>, %arg5: memref<32x32xf32, #tpu.memory_space<vmem>>, %arg6: memref<32x64xf32, #tpu.memory_space<vmem>>, %arg7: memref<64x32xf32, #tpu.memory_space<vmem>>, %arg8: memref<9x32xf32, #tpu.memory_space<vmem>>, %arg9: memref<1x64xf32, #tpu.memory_space<vmem>>, %arg10: memref<2x8x32xf32, #tpu.memory_space<vmem>>) attributes {dimension_semantics = [], scalar_prefetch = 0 : i64, scratch_operands = 0 : i64, tpu.core_type = #tpu.core_type<tc>} {
    %c0 = arith.constant 0 : index
    %c0_0 = arith.constant 0 : index
    %0 = vector.load %arg2[%c0, %c0_0] : memref<32x32xf32, #tpu.memory_space<vmem>>, vector<32x32xf32>
    %c0_1 = arith.constant 0 : index
    %c0_2 = arith.constant 0 : index
    %1 = vector.load %arg3[%c0_1, %c0_2] : memref<32x32xf32, #tpu.memory_space<vmem>>, vector<32x32xf32>
    %c0_3 = arith.constant 0 : index
    %c0_4 = arith.constant 0 : index
    %2 = vector.load %arg4[%c0_3, %c0_4] : memref<32x32xf32, #tpu.memory_space<vmem>>, vector<32x32xf32>
    %c0_5 = arith.constant 0 : index
    %c0_6 = arith.constant 0 : index
    %3 = vector.load %arg5[%c0_5, %c0_6] : memref<32x32xf32, #tpu.memory_space<vmem>>, vector<32x32xf32>
    %c0_7 = arith.constant 0 : index
    %c0_8 = arith.constant 0 : index
    %4 = vector.load %arg6[%c0_7, %c0_8] : memref<32x64xf32, #tpu.memory_space<vmem>>, vector<32x64xf32>
    %c0_9 = arith.constant 0 : index
    %c0_10 = arith.constant 0 : index
    %5 = vector.load %arg7[%c0_9, %c0_10] : memref<64x32xf32, #tpu.memory_space<vmem>>, vector<64x32xf32>
    %c0_11 = arith.constant 0 : index
    %c0_12 = arith.constant 0 : index
    %6 = vector.load %arg9[%c0_11, %c0_12] : memref<1x64xf32, #tpu.memory_space<vmem>>, vector<1x64xf32>
    %c0_13 = arith.constant 0 : index
    %c0_14 = arith.constant 0 : index
    %7 = vector.load %arg8[%c0_13, %c0_14] : memref<9x32xf32, #tpu.memory_space<vmem>>, vector<9x32xf32>
    %8 = vector.extract_strided_slice %7 {offsets = [0, 0], sizes = [1, 32], strides = [1, 1]} : vector<9x32xf32> to vector<1x32xf32>
    %9 = vector.extract_strided_slice %7 {offsets = [1, 0], sizes = [1, 32], strides = [1, 1]} : vector<9x32xf32> to vector<1x32xf32>
    %10 = vector.extract_strided_slice %7 {offsets = [2, 0], sizes = [1, 32], strides = [1, 1]} : vector<9x32xf32> to vector<1x32xf32>
    %11 = vector.extract_strided_slice %7 {offsets = [3, 0], sizes = [1, 32], strides = [1, 1]} : vector<9x32xf32> to vector<1x32xf32>
    %12 = vector.extract_strided_slice %7 {offsets = [4, 0], sizes = [1, 32], strides = [1, 1]} : vector<9x32xf32> to vector<1x32xf32>
    %13 = vector.extract_strided_slice %7 {offsets = [5, 0], sizes = [1, 32], strides = [1, 1]} : vector<9x32xf32> to vector<1x32xf32>
    %14 = vector.extract_strided_slice %7 {offsets = [6, 0], sizes = [1, 32], strides = [1, 1]} : vector<9x32xf32> to vector<1x32xf32>
    %15 = vector.extract_strided_slice %7 {offsets = [7, 0], sizes = [1, 32], strides = [1, 1]} : vector<9x32xf32> to vector<1x32xf32>
    %16 = vector.extract_strided_slice %7 {offsets = [8, 0], sizes = [1, 32], strides = [1, 1]} : vector<9x32xf32> to vector<1x32xf32>
    %c0_15 = arith.constant 0 : index
    %c0_16 = arith.constant 0 : index
    %c0_17 = arith.constant 0 : index
    %17 = vector.load %arg0[%c0_15, %c0_16, %c0_17] : memref<2x8x32xf32, #tpu.memory_space<vmem>>, vector<1x8x32xf32>
    %18 = vector.shape_cast %17 : vector<1x8x32xf32> to vector<8x32xf32>
    %c0_18 = arith.constant 0 : index
    %c0_19 = arith.constant 0 : index
    %c0_20 = arith.constant 0 : index
    %19 = vector.load %arg1[%c0_18, %c0_19, %c0_20] : memref<2x8x32xf32, #tpu.memory_space<vmem>>, vector<1x8x32xf32>
    %20 = vector.shape_cast %19 : vector<1x8x32xf32> to vector<8x32xf32>
    %cst = arith.constant dense<0.000000e+00> : vector<8x32xf32>
    %21 = tpu.matmul %18, %0, %cst {dimension_numbers = #tpu.dot_dimension_numbers<[1], [0], [0], [1], [0, 0, 1, 1], [], []>} : vector<8x32xf32>, vector<32x32xf32>, vector<8x32xf32> -> vector<8x32xf32>
    %cst_21 = arith.constant dense<0.000000e+00> : vector<8x32xf32>
    %22 = tpu.matmul %21, %1, %cst_21 {dimension_numbers = #tpu.dot_dimension_numbers<[1], [0], [0], [1], [0, 0, 1, 1], [], []>} : vector<8x32xf32>, vector<32x32xf32>, vector<8x32xf32> -> vector<8x32xf32>
    %cst_22 = arith.constant dense<0.000000e+00> : vector<32xf32>
    %23 = vector.multi_reduction <add>, %22, %cst_22 [0] : vector<8x32xf32> to vector<32xf32>
    %24 = vector.shape_cast %23 : vector<32xf32> to vector<1x32xf32>
    %25 = arith.addf %24, %8 : vector<1x32xf32>
    %26 = vector.broadcast %25 : vector<1x32xf32> to vector<8x32xf32>
    %27 = arith.addf %26, %18 : vector<8x32xf32>
    %cst_23 = arith.constant dense<0.000000e+00> : vector<8xf32>
    %28 = vector.multi_reduction <add>, %27, %cst_23 [1] : vector<8x32xf32> to vector<8xf32>
    %29 = vector.shape_cast %28 : vector<8xf32> to vector<8x1xf32>
    %cst_24 = arith.constant 3.200000e+01 : f32
    %30 = vector.broadcast %cst_24 : f32 to vector<8x1xf32>
    %31 = arith.divf %29, %30 : vector<8x1xf32>
    %32 = arith.mulf %27, %27 : vector<8x32xf32>
    %cst_25 = arith.constant dense<0.000000e+00> : vector<8xf32>
    %33 = vector.multi_reduction <add>, %32, %cst_25 [1] : vector<8x32xf32> to vector<8xf32>
    %34 = vector.shape_cast %33 : vector<8xf32> to vector<8x1xf32>
    %cst_26 = arith.constant 3.200000e+01 : f32
    %35 = vector.broadcast %cst_26 : f32 to vector<8x1xf32>
    %36 = arith.divf %34, %35 : vector<8x1xf32>
    %37 = arith.mulf %31, %31 : vector<8x1xf32>
    %38 = arith.subf %36, %37 : vector<8x1xf32>
    %39 = vector.broadcast %31 : vector<8x1xf32> to vector<8x32xf32>
    %40 = arith.subf %27, %39 : vector<8x32xf32>
    %cst_27 = arith.constant 9.99999974E-6 : f32
    %41 = vector.broadcast %cst_27 : f32 to vector<8x1xf32>
    %42 = arith.addf %38, %41 : vector<8x1xf32>
    %43 = math.rsqrt %42 : vector<8x1xf32>
    %44 = vector.broadcast %43 : vector<8x1xf32> to vector<8x32xf32>
    %45 = arith.mulf %40, %44 : vector<8x32xf32>
    %46 = vector.broadcast %9 : vector<1x32xf32> to vector<8x32xf32>
    %47 = arith.mulf %45, %46 : vector<8x32xf32>
    %48 = vector.broadcast %10 : vector<1x32xf32> to vector<8x32xf32>
    %49 = arith.addf %47, %48 : vector<8x32xf32>
    %cst_28 = arith.constant dense<0.000000e+00> : vector<8x32xf32>
    %50 = tpu.matmul %20, %2, %cst_28 {dimension_numbers = #tpu.dot_dimension_numbers<[1], [0], [0], [1], [0, 0, 1, 1], [], []>} : vector<8x32xf32>, vector<32x32xf32>, vector<8x32xf32> -> vector<8x32xf32>
    %cst_29 = arith.constant dense<0.000000e+00> : vector<8x32xf32>
    %51 = tpu.matmul %50, %3, %cst_29 {dimension_numbers = #tpu.dot_dimension_numbers<[1], [0], [0], [1], [0, 0, 1, 1], [], []>} : vector<8x32xf32>, vector<32x32xf32>, vector<8x32xf32> -> vector<8x32xf32>
    %cst_30 = arith.constant dense<0.000000e+00> : vector<32xf32>
    %52 = vector.multi_reduction <add>, %51, %cst_30 [0] : vector<8x32xf32> to vector<32xf32>
    %53 = vector.shape_cast %52 : vector<32xf32> to vector<1x32xf32>
    %54 = arith.addf %53, %11 : vector<1x32xf32>
    %55 = vector.broadcast %54 : vector<1x32xf32> to vector<8x32xf32>
    %56 = arith.addf %55, %49 : vector<8x32xf32>
    %cst_31 = arith.constant dense<0.000000e+00> : vector<8xf32>
    %57 = vector.multi_reduction <add>, %56, %cst_31 [1] : vector<8x32xf32> to vector<8xf32>
    %58 = vector.shape_cast %57 : vector<8xf32> to vector<8x1xf32>
    %cst_32 = arith.constant 3.200000e+01 : f32
    %59 = vector.broadcast %cst_32 : f32 to vector<8x1xf32>
    %60 = arith.divf %58, %59 : vector<8x1xf32>
    %61 = arith.mulf %56, %56 : vector<8x32xf32>
    %cst_33 = arith.constant dense<0.000000e+00> : vector<8xf32>
    %62 = vector.multi_reduction <add>, %61, %cst_33 [1] : vector<8x32xf32> to vector<8xf32>
    %63 = vector.shape_cast %62 : vector<8xf32> to vector<8x1xf32>
    %cst_34 = arith.constant 3.200000e+01 : f32
    %64 = vector.broadcast %cst_34 : f32 to vector<8x1xf32>
    %65 = arith.divf %63, %64 : vector<8x1xf32>
    %66 = arith.mulf %60, %60 : vector<8x1xf32>
    %67 = arith.subf %65, %66 : vector<8x1xf32>
    %68 = vector.broadcast %60 : vector<8x1xf32> to vector<8x32xf32>
    %69 = arith.subf %56, %68 : vector<8x32xf32>
    %cst_35 = arith.constant 9.99999974E-6 : f32
    %70 = vector.broadcast %cst_35 : f32 to vector<8x1xf32>
    %71 = arith.addf %67, %70 : vector<8x1xf32>
    %72 = math.rsqrt %71 : vector<8x1xf32>
    %73 = vector.broadcast %72 : vector<8x1xf32> to vector<8x32xf32>
    %74 = arith.mulf %69, %73 : vector<8x32xf32>
    %75 = vector.broadcast %12 : vector<1x32xf32> to vector<8x32xf32>
    %76 = arith.mulf %74, %75 : vector<8x32xf32>
    %77 = vector.broadcast %13 : vector<1x32xf32> to vector<8x32xf32>
    %78 = arith.addf %76, %77 : vector<8x32xf32>
    %cst_36 = arith.constant dense<0.000000e+00> : vector<8x64xf32>
    %79 = tpu.matmul %78, %4, %cst_36 {dimension_numbers = #tpu.dot_dimension_numbers<[1], [0], [0], [1], [0, 0, 1, 1], [], []>} : vector<8x32xf32>, vector<32x64xf32>, vector<8x64xf32> -> vector<8x64xf32>
    %80 = vector.broadcast %6 : vector<1x64xf32> to vector<8x64xf32>
    %81 = arith.addf %79, %80 : vector<8x64xf32>
    %cst_37 = arith.constant 0.000000e+00 : f32
    %82 = vector.broadcast %cst_37 : f32 to vector<8x64xf32>
    %83 = arith.maximumf %81, %82 : vector<8x64xf32>
    %cst_38 = arith.constant dense<0.000000e+00> : vector<8x32xf32>
    %84 = tpu.matmul %83, %5, %cst_38 {dimension_numbers = #tpu.dot_dimension_numbers<[1], [0], [0], [1], [0, 0, 1, 1], [], []>} : vector<8x64xf32>, vector<64x32xf32>, vector<8x32xf32> -> vector<8x32xf32>
    %85 = vector.broadcast %14 : vector<1x32xf32> to vector<8x32xf32>
    %86 = arith.addf %84, %85 : vector<8x32xf32>
    %87 = arith.addf %86, %78 : vector<8x32xf32>
    %cst_39 = arith.constant dense<0.000000e+00> : vector<8xf32>
    %88 = vector.multi_reduction <add>, %87, %cst_39 [1] : vector<8x32xf32> to vector<8xf32>
    %89 = vector.shape_cast %88 : vector<8xf32> to vector<8x1xf32>
    %cst_40 = arith.constant 3.200000e+01 : f32
    %90 = vector.broadcast %cst_40 : f32 to vector<8x1xf32>
    %91 = arith.divf %89, %90 : vector<8x1xf32>
    %92 = arith.mulf %87, %87 : vector<8x32xf32>
    %cst_41 = arith.constant dense<0.000000e+00> : vector<8xf32>
    %93 = vector.multi_reduction <add>, %92, %cst_41 [1] : vector<8x32xf32> to vector<8xf32>
    %94 = vector.shape_cast %93 : vector<8xf32> to vector<8x1xf32>
    %cst_42 = arith.constant 3.200000e+01 : f32
    %95 = vector.broadcast %cst_42 : f32 to vector<8x1xf32>
    %96 = arith.divf %94, %95 : vector<8x1xf32>
    %97 = arith.mulf %91, %91 : vector<8x1xf32>
    %98 = arith.subf %96, %97 : vector<8x1xf32>
    %99 = vector.broadcast %91 : vector<8x1xf32> to vector<8x32xf32>
    %100 = arith.subf %87, %99 : vector<8x32xf32>
    %cst_43 = arith.constant 9.99999974E-6 : f32
    %101 = vector.broadcast %cst_43 : f32 to vector<8x1xf32>
    %102 = arith.addf %98, %101 : vector<8x1xf32>
    %103 = math.rsqrt %102 : vector<8x1xf32>
    %104 = vector.broadcast %103 : vector<8x1xf32> to vector<8x32xf32>
    %105 = arith.mulf %100, %104 : vector<8x32xf32>
    %106 = vector.broadcast %15 : vector<1x32xf32> to vector<8x32xf32>
    %107 = arith.mulf %105, %106 : vector<8x32xf32>
    %108 = vector.broadcast %16 : vector<1x32xf32> to vector<8x32xf32>
    %109 = arith.addf %107, %108 : vector<8x32xf32>
    %c0_44 = arith.constant 0 : index
    %c0_45 = arith.constant 0 : index
    %c0_46 = arith.constant 0 : index
    %110 = vector.load %arg10[%c0_44, %c0_45, %c0_46] : memref<2x8x32xf32, #tpu.memory_space<vmem>>, vector<1x8x32xf32>
    %111 = vector.shape_cast %110 : vector<1x8x32xf32> to vector<8x32xf32>
    %112 = vector.shape_cast %109 : vector<8x32xf32> to vector<1x8x32xf32>
    tpu.vector_store %arg10[%c0_44, %c0_45, %c0_46], %112 {strides = array<i32>} : memref<2x8x32xf32, #tpu.memory_space<vmem>>, vector<1x8x32xf32>,
    %c1 = arith.constant 1 : index
    %c0_47 = arith.constant 0 : index
    %c0_48 = arith.constant 0 : index
    %113 = vector.load %arg0[%c1, %c0_47, %c0_48] : memref<2x8x32xf32, #tpu.memory_space<vmem>>, vector<1x8x32xf32>
    %114 = vector.shape_cast %113 : vector<1x8x32xf32> to vector<8x32xf32>
    %c1_49 = arith.constant 1 : index
    %c0_50 = arith.constant 0 : index
    %c0_51 = arith.constant 0 : index
    %115 = vector.load %arg1[%c1_49, %c0_50, %c0_51] : memref<2x8x32xf32, #tpu.memory_space<vmem>>, vector<1x8x32xf32>
    %116 = vector.shape_cast %115 : vector<1x8x32xf32> to vector<8x32xf32>
    %cst_52 = arith.constant dense<0.000000e+00> : vector<8x32xf32>
    %117 = tpu.matmul %114, %0, %cst_52 {dimension_numbers = #tpu.dot_dimension_numbers<[1], [0], [0], [1], [0, 0, 1, 1], [], []>} : vector<8x32xf32>, vector<32x32xf32>, vector<8x32xf32> -> vector<8x32xf32>
    %cst_53 = arith.constant dense<0.000000e+00> : vector<8x32xf32>
    %118 = tpu.matmul %117, %1, %cst_53 {dimension_numbers = #tpu.dot_dimension_numbers<[1], [0], [0], [1], [0, 0, 1, 1], [], []>} : vector<8x32xf32>, vector<32x32xf32>, vector<8x32xf32> -> vector<8x32xf32>
    %cst_54 = arith.constant dense<0.000000e+00> : vector<32xf32>
    %119 = vector.multi_reduction <add>, %118, %cst_54 [0] : vector<8x32xf32> to vector<32xf32>
    %120 = vector.shape_cast %119 : vector<32xf32> to vector<1x32xf32>
    %121 = arith.addf %120, %8 : vector<1x32xf32>
    %122 = vector.broadcast %121 : vector<1x32xf32> to vector<8x32xf32>
    %123 = arith.addf %122, %114 : vector<8x32xf32>
    %cst_55 = arith.constant dense<0.000000e+00> : vector<8xf32>
    %124 = vector.multi_reduction <add>, %123, %cst_55 [1] : vector<8x32xf32> to vector<8xf32>
    %125 = vector.shape_cast %124 : vector<8xf32> to vector<8x1xf32>
    %cst_56 = arith.constant 3.200000e+01 : f32
    %126 = vector.broadcast %cst_56 : f32 to vector<8x1xf32>
    %127 = arith.divf %125, %126 : vector<8x1xf32>
    %128 = arith.mulf %123, %123 : vector<8x32xf32>
    %cst_57 = arith.constant dense<0.000000e+00> : vector<8xf32>
    %129 = vector.multi_reduction <add>, %128, %cst_57 [1] : vector<8x32xf32> to vector<8xf32>
    %130 = vector.shape_cast %129 : vector<8xf32> to vector<8x1xf32>
    %cst_58 = arith.constant 3.200000e+01 : f32
    %131 = vector.broadcast %cst_58 : f32 to vector<8x1xf32>
    %132 = arith.divf %130, %131 : vector<8x1xf32>
    %133 = arith.mulf %127, %127 : vector<8x1xf32>
    %134 = arith.subf %132, %133 : vector<8x1xf32>
    %135 = vector.broadcast %127 : vector<8x1xf32> to vector<8x32xf32>
    %136 = arith.subf %123, %135 : vector<8x32xf32>
    %cst_59 = arith.constant 9.99999974E-6 : f32
    %137 = vector.broadcast %cst_59 : f32 to vector<8x1xf32>
    %138 = arith.addf %134, %137 : vector<8x1xf32>
    %139 = math.rsqrt %138 : vector<8x1xf32>
    %140 = vector.broadcast %139 : vector<8x1xf32> to vector<8x32xf32>
    %141 = arith.mulf %136, %140 : vector<8x32xf32>
    %142 = vector.broadcast %9 : vector<1x32xf32> to vector<8x32xf32>
    %143 = arith.mulf %141, %142 : vector<8x32xf32>
    %144 = vector.broadcast %10 : vector<1x32xf32> to vector<8x32xf32>
    %145 = arith.addf %143, %144 : vector<8x32xf32>
    %cst_60 = arith.constant dense<0.000000e+00> : vector<8x32xf32>
    %146 = tpu.matmul %116, %2, %cst_60 {dimension_numbers = #tpu.dot_dimension_numbers<[1], [0], [0], [1], [0, 0, 1, 1], [], []>} : vector<8x32xf32>, vector<32x32xf32>, vector<8x32xf32> -> vector<8x32xf32>
    %cst_61 = arith.constant dense<0.000000e+00> : vector<8x32xf32>
    %147 = tpu.matmul %146, %3, %cst_61 {dimension_numbers = #tpu.dot_dimension_numbers<[1], [0], [0], [1], [0, 0, 1, 1], [], []>} : vector<8x32xf32>, vector<32x32xf32>, vector<8x32xf32> -> vector<8x32xf32>
    %cst_62 = arith.constant dense<0.000000e+00> : vector<32xf32>
    %148 = vector.multi_reduction <add>, %147, %cst_62 [0] : vector<8x32xf32> to vector<32xf32>
    %149 = vector.shape_cast %148 : vector<32xf32> to vector<1x32xf32>
    %150 = arith.addf %149, %11 : vector<1x32xf32>
    %151 = vector.broadcast %150 : vector<1x32xf32> to vector<8x32xf32>
    %152 = arith.addf %151, %145 : vector<8x32xf32>
    %cst_63 = arith.constant dense<0.000000e+00> : vector<8xf32>
    %153 = vector.multi_reduction <add>, %152, %cst_63 [1] : vector<8x32xf32> to vector<8xf32>
    %154 = vector.shape_cast %153 : vector<8xf32> to vector<8x1xf32>
    %cst_64 = arith.constant 3.200000e+01 : f32
    %155 = vector.broadcast %cst_64 : f32 to vector<8x1xf32>
    %156 = arith.divf %154, %155 : vector<8x1xf32>
    %157 = arith.mulf %152, %152 : vector<8x32xf32>
    %cst_65 = arith.constant dense<0.000000e+00> : vector<8xf32>
    %158 = vector.multi_reduction <add>, %157, %cst_65 [1] : vector<8x32xf32> to vector<8xf32>
    %159 = vector.shape_cast %158 : vector<8xf32> to vector<8x1xf32>
    %cst_66 = arith.constant 3.200000e+01 : f32
    %160 = vector.broadcast %cst_66 : f32 to vector<8x1xf32>
    %161 = arith.divf %159, %160 : vector<8x1xf32>
    %162 = arith.mulf %156, %156 : vector<8x1xf32>
    %163 = arith.subf %161, %162 : vector<8x1xf32>
    %164 = vector.broadcast %156 : vector<8x1xf32> to vector<8x32xf32>
    %165 = arith.subf %152, %164 : vector<8x32xf32>
    %cst_67 = arith.constant 9.99999974E-6 : f32
    %166 = vector.broadcast %cst_67 : f32 to vector<8x1xf32>
    %167 = arith.addf %163, %166 : vector<8x1xf32>
    %168 = math.rsqrt %167 : vector<8x1xf32>
    %169 = vector.broadcast %168 : vector<8x1xf32> to vector<8x32xf32>
    %170 = arith.mulf %165, %169 : vector<8x32xf32>
    %171 = vector.broadcast %12 : vector<1x32xf32> to vector<8x32xf32>
    %172 = arith.mulf %170, %171 : vector<8x32xf32>
    %173 = vector.broadcast %13 : vector<1x32xf32> to vector<8x32xf32>
    %174 = arith.addf %172, %173 : vector<8x32xf32>
    %cst_68 = arith.constant dense<0.000000e+00> : vector<8x64xf32>
    %175 = tpu.matmul %174, %4, %cst_68 {dimension_numbers = #tpu.dot_dimension_numbers<[1], [0], [0], [1], [0, 0, 1, 1], [], []>} : vector<8x32xf32>, vector<32x64xf32>, vector<8x64xf32> -> vector<8x64xf32>
    %176 = vector.broadcast %6 : vector<1x64xf32> to vector<8x64xf32>
    %177 = arith.addf %175, %176 : vector<8x64xf32>
    %cst_69 = arith.constant 0.000000e+00 : f32
    %178 = vector.broadcast %cst_69 : f32 to vector<8x64xf32>
    %179 = arith.maximumf %177, %178 : vector<8x64xf32>
    %cst_70 = arith.constant dense<0.000000e+00> : vector<8x32xf32>
    %180 = tpu.matmul %179, %5, %cst_70 {dimension_numbers = #tpu.dot_dimension_numbers<[1], [0], [0], [1], [0, 0, 1, 1], [], []>} : vector<8x64xf32>, vector<64x32xf32>, vector<8x32xf32> -> vector<8x32xf32>
    %181 = vector.broadcast %14 : vector<1x32xf32> to vector<8x32xf32>
    %182 = arith.addf %180, %181 : vector<8x32xf32>
    %183 = arith.addf %182, %174 : vector<8x32xf32>
    %cst_71 = arith.constant dense<0.000000e+00> : vector<8xf32>
    %184 = vector.multi_reduction <add>, %183, %cst_71 [1] : vector<8x32xf32> to vector<8xf32>
    %185 = vector.shape_cast %184 : vector<8xf32> to vector<8x1xf32>
    %cst_72 = arith.constant 3.200000e+01 : f32
    %186 = vector.broadcast %cst_72 : f32 to vector<8x1xf32>
    %187 = arith.divf %185, %186 : vector<8x1xf32>
    %188 = arith.mulf %183, %183 : vector<8x32xf32>
    %cst_73 = arith.constant dense<0.000000e+00> : vector<8xf32>
    %189 = vector.multi_reduction <add>, %188, %cst_73 [1] : vector<8x32xf32> to vector<8xf32>
    %190 = vector.shape_cast %189 : vector<8xf32> to vector<8x1xf32>
    %cst_74 = arith.constant 3.200000e+01 : f32
    %191 = vector.broadcast %cst_74 : f32 to vector<8x1xf32>
    %192 = arith.divf %190, %191 : vector<8x1xf32>
    %193 = arith.mulf %187, %187 : vector<8x1xf32>
    %194 = arith.subf %192, %193 : vector<8x1xf32>
    %195 = vector.broadcast %187 : vector<8x1xf32> to vector<8x32xf32>
    %196 = arith.subf %183, %195 : vector<8x32xf32>
    %cst_75 = arith.constant 9.99999974E-6 : f32
    %197 = vector.broadcast %cst_75 : f32 to vector<8x1xf32>
    %198 = arith.addf %194, %197 : vector<8x1xf32>
    %199 = math.rsqrt %198 : vector<8x1xf32>
    %200 = vector.broadcast %199 : vector<8x1xf32> to vector<8x32xf32>
    %201 = arith.mulf %196, %200 : vector<8x32xf32>
    %202 = vector.broadcast %15 : vector<1x32xf32> to vector<8x32xf32>
    %203 = arith.mulf %201, %202 : vector<8x32xf32>
    %204 = vector.broadcast %16 : vector<1x32xf32> to vector<8x32xf32>
    %205 = arith.addf %203, %204 : vector<8x32xf32>
    %c1_76 = arith.constant 1 : index
    %c0_77 = arith.constant 0 : index
    %c0_78 = arith.constant 0 : index
    %206 = vector.load %arg10[%c1_76, %c0_77, %c0_78] : memref<2x8x32xf32, #tpu.memory_space<vmem>>, vector<1x8x32xf32>
    %207 = vector.shape_cast %206 : vector<1x8x32xf32> to vector<8x32xf32>
    %208 = vector.shape_cast %205 : vector<8x32xf32> to vector<1x8x32xf32>
    tpu.vector_store %arg10[%c1_76, %c0_77, %c0_78], %208 {strides = array<i32>} : memref<2x8x32xf32, #tpu.memory_space<vmem>>, vector<1x8x32xf32>,
    return
  }
}

</mosaic_0001>

<bundles_post_ra>
// kernel: tpu_custom_call.1
= control target key start
LH: loop header
LB: loop body
LE: loop exit
PB: predicated region body
PF: predicated region fallthrough
CT: control target
= control target key end

     0   :  { %15 = vsyncpa [#allocation3], 0  ;;  %s2086_s0 = inlined_call_operand.hbm [shape: f32[2,8,32], index: 0, kind: input, shape index: {}]   ;;  %s2087_s1 = inlined_call_operand.hbm [shape: f32[2,8,32], index: 1, kind: input, shape index: {}]   ;;  %s2088_s2 = inlined_call_operand.vmem [shape: f32[32,32], index: 2, kind: input, shape index: {}]   ;;  %s2089_s3 = inlined_call_operand.vmem [shape: f32[32,32], index: 3, kind: input, shape index: {}]   ;;  %s2090_s4 = inlined_call_operand.vmem [shape: f32[32,32], index: 4, kind: input, shape index: {}]   ;;  %s2091_s5 = inlined_call_operand.hbm [shape: f32[32,32], index: 5, kind: input, shape index: {}]   ;;  %s2092_s6 = inlined_call_operand.hbm [shape: f32[32,64], index: 6, kind: input, shape index: {}]   ;;  %s2093_s7 = inlined_call_operand.vmem [shape: f32[64,32], index: 7, kind: input, shape index: {}]   ;;  %s2094_s8 = inlined_call_operand.vmem [shape: f32[9,32], index: 8, kind: input, shape index: {}]   ;;  %s2095_s9 = inlined_call_operand.vmem [shape: f32[1,64], index: 9, kind: input, shape index: {}]   ;;  %s2096_s10 = inlined_call_operand.hbm [shape: f32[2,8,32], index: 10, kind: output, shape index: {}]  }
   0x1   :  { %16 = vsyncpa [#allocation6], 0 }
   0x2   :  { %17 = vsyncpa [#allocation9], 0 }
   0x3   :  { %18 = vsyncpa [#allocation4], 0  ;;  %s1675_s13 = smov [#allocation5]   ;;  %s1676_s15 = smov [#allocation2]  }
   0x4   :  { %s36_s14 = sshll.u32 %s1675_s13, 4  ;;  %s24_s16 = sshll.u32 %s1676_s15, 4  ;;  %s37_s14 = int_to_ptr.vmem [resolvable:$true] %s36_s14  ;;  %s1740_s16 = int_to_ptr.vmem [resolvable:$true] %s24_s16 }
   0x5   :  { %s1557_s19 = scalar_lea.hbm %s2087_s1, 256 }
   0x6   :  { %p1558_p0 = scmp.ne.s32.totalorder %s2087_s1, %s1557_s19  ;;  %p1561_p1 = scmp.lt.u32.totalorder %s1557_s19, %s2087_s1 }
   0x8   :  { %p1563_p2 = pnand %p1561_p1, %p1558_p0 }
   0xa   :  { %1566 = shalt.err (!%p1563_p2)
}
   0xb   :  { %s1567_s24 = scalar_lea.vmem %s37_s14, 256  ;;  %p1572_p4 = scmp.lt.s32.totalorder %s37_s14, %s37_s14 }
   0xc   :  { %p1568_p3 = scmp.ne.s32.totalorder %s37_s14, %s1567_s24  ;;  %p1573_p5 = scmp.lt.s32.totalorder %s1567_s24, %s1567_s24 }
   0xe   :  { %p1574_p6 = por %p1573_p5, %p1572_p4 }
  0x10   :  { %p1575_p7 = pnand %p1574_p6, %p1568_p3 }
  0x12   :  { %1578 = shalt.err (!%p1575_p7)
}
  0x13   :  { %s1677_s25 = smov 128   ;;  %s1678_s26 = smov 8  }
  0x14   :  { %42 = dma.hbm_to_vmem [thread:$0]  %s2087_s1, 256, %s37_s14, [#allocation6], %s1677_s25, %s1677_s25, %s1678_s26  }
  0x15   :  { %s1579_s11 = scalar_lea.hbm %s2086_s0, 256 }
  0x16   :  { %p1580_p8 = scmp.ne.s32.totalorder %s2086_s0, %s1579_s11  ;;  %p1583_p9 = scmp.lt.u32.totalorder %s1579_s11, %s2086_s0 }
  0x18   :  { %p1585_p10 = pnand %p1583_p9, %p1580_p8 }
  0x1a   :  { %1588 = shalt.err (!%p1585_p10)
}
  0x1b   :  { %s1589_s18 = scalar_lea.vmem %s1740_s16, 256  ;;  %p1594_p12 = scmp.lt.s32.totalorder %s1740_s16, %s1740_s16 }
  0x1c   :  { %p1590_p11 = scmp.ne.s32.totalorder %s1740_s16, %s1589_s18  ;;  %p1595_p13 = scmp.lt.s32.totalorder %s1589_s18, %s1589_s18 }
  0x1e   :  { %p1596_p0 = por %p1595_p13, %p1594_p12 }
  0x20   :  { %p1597_p1 = pnand %p1596_p0, %p1590_p11 }
  0x22   :  { %1600 = shalt.err (!%p1597_p1)
}
  0x23   :  { %30 = dma.hbm_to_vmem [thread:$0]  %s2086_s0, 256, %s1740_s16, [#allocation3], %s1677_s25, %s1677_s25, %s1678_s26  }
  0x24   :  { %s1679_s19 = smov [#allocation7]   ;;  %s1680_s21 = smov [#allocation8]  }
  0x25   :  { %s54_s20 = sshll.u32 %s1679_s19, 4  ;;  %s66_s22 = sshll.u32 %s1680_s21, 4  ;;  %s55_s20 = int_to_ptr.vmem [resolvable:$true] %s54_s20  ;;  %s1777_s22 = int_to_ptr.vmem [resolvable:$true] %s66_s22 }
  0x26   :  { %s1601_s27 = scalar_lea.hbm %s2091_s5, 512 }
  0x27   :  { %p1602_p2 = scmp.ne.s32.totalorder %s2091_s5, %s1601_s27  ;;  %p1605_p3 = scmp.lt.u32.totalorder %s1601_s27, %s2091_s5 }
  0x29   :  { %p1607_p4 = pnand %p1605_p3, %p1602_p2 }
  0x2b   :  { %1610 = shalt.err (!%p1607_p4)
}
  0x2c   :  { %s1611_s0 = scalar_lea.vmem %s55_s20, 512  ;;  %p1616_p6 = scmp.lt.s32.totalorder %s55_s20, %s55_s20 }
  0x2d   :  { %p1612_p5 = scmp.ne.s32.totalorder %s55_s20, %s1611_s0  ;;  %p1617_p7 = scmp.lt.s32.totalorder %s1611_s0, %s1611_s0 }
  0x2f   :  { %p1618_p8 = por %p1617_p7, %p1616_p6 }
  0x31   :  { %p1619_p9 = pnand %p1618_p8, %p1612_p5 }
  0x33   :  { %1622 = shalt.err (!%p1619_p9)
}
  0x34   :  { %60 = dma.hbm_to_vmem [thread:$0]  %s2091_s5, 512, %s55_s20, [#allocation6], %s1677_s25, %s1677_s25, %s1678_s26  }
  0x35   :  { %s1623_s17 = scalar_lea.hbm %s2092_s6, 512 }
  0x36   :  { %p1624_p10 = scmp.ne.s32.totalorder %s2092_s6, %s1623_s17  ;;  %p1627_p11 = scmp.lt.u32.totalorder %s1623_s17, %s2092_s6 }
  0x38   :  { %p1629_p12 = pnand %p1627_p11, %p1624_p10 }
  0x3a   :  { %1632 = shalt.err (!%p1629_p12)
}
  0x3b   :  { %s1633_s21 = scalar_lea.vmem %s1777_s22, 512  ;;  %p1638_p0 = scmp.lt.s32.totalorder %s1777_s22, %s1777_s22 }
  0x3c   :  { %p1634_p13 = scmp.ne.s32.totalorder %s1777_s22, %s1633_s21  ;;  %p1639_p1 = scmp.lt.s32.totalorder %s1633_s21, %s1633_s21 }
  0x3e   :  { %p1640_p2 = por %p1639_p1, %p1638_p0 }
  0x40   :  { %p1641_p3 = pnand %p1640_p2, %p1634_p13 }
  0x42   :  { %1644 = shalt.err (!%p1641_p3)
}
  0x43   :  { %72 = dma.hbm_to_vmem [thread:$0]  %s2092_s6, 512, %s1777_s22, [#allocation9], %s1677_s25, %s1677_s25, %s1678_s26  }
  0x44   :  { %1667 = dma.done.wait [#allocation3], 256  }
  0x45   :  { %1668 = vsyncadd [#allocation3], 4294967040 }
  0x46   :  { %1669 = dma.done.wait [#allocation6], 768  }
  0x47   :  { %1670 = vsyncadd [#allocation6], 4294966528 }
  0x48   :  { %1671 = dma.done.wait [#allocation9], 512  }
  0x49   :  { %1672 = vsyncadd [#allocation9], 4294966784  ;;  %v1681_v0 = vmov 0.0|0.0   ;;  %vm1682_vm0 = vmmov 0   ;;  %v1683_v1 = vmov 0.0   ;;  %v91_v2 = vld [vmem:[%s2088_s2] sm:$0xff]  ;;  %v279_v37 = vlaneseq }
  0x4a   :  { %1451 = vmatprep.subr.bf16.mxu1 %v1681_v0  ;;  %1311 = vmatprep.mubr.msk.f32.mxu1 %vm1682_vm0, %v1683_v1  ;;  %v92_v3 = vld [vmem:[%s2088_s2 + $0x8] sm:$0xff]  ;;  %v93_v4 = vld [vmem:[%s2088_s2 + $0x10] sm:$0xff]  ;;  %v94_v6 = vld [vmem:[%s2088_s2 + $0x18] sm:$0xff]  ;;  %vm124_vm1 = vcmask 261120   ;;  %vm578_vm2 = vcmask 523264  }
  0x4b   :  { %1463 = vmatprep.subr.bf16.mxu0 %v1681_v0  ;;  %1333 = vmatprep.mubr.msk.f32.mxu0 %vm1682_vm0, %v1683_v1  ;;  %v1829_v5 = vpack.c.bf16 %v92_v3, %v91_v2  ;;  %v99_v7 = vld [vmem:[%s2090_s4] sm:$0xff]  ;;  %v100_v8 = vld [vmem:[%s2090_s4 + $0x8] sm:$0xff]  ;;  %v101_v9 = vld [vmem:[%s2090_s4 + $0x10] sm:$0xff]  ;;  %v1847_v11 = vpack.c.bf16 %v94_v6, %v93_v4  ;;  %v1901_v40 = vshrl.u32 %v279_v37, 7 }
  0x4c   :  { %v102_v10 = vld [vmem:[%s2090_s4 + $0x18] sm:$0xff]  ;;  %v1849_v12 = vpack.c.bf16 %v100_v8, %v99_v7  ;;  %v95_v13 = vld [vmem:[%s2089_s3] sm:$0xff]  ;;  %v96_v14 = vld [vmem:[%s2089_s3 + $0x8] sm:$0xff] }
  0x4d   :  { %1453 = vmatpush3.bf16.msra.mxu1 %v1829_v5  ;;  %v1859_v15 = vpack.c.bf16 %v102_v10, %v101_v9  ;;  %v122_v16 = vld [vmem:[#allocation2] sm:$0xff]  ;;  %v1863_v17 = vpack.c.bf16 %v96_v14, %v95_v13  ;;  %v97_v18 = vld [vmem:[%s2089_s3 + $0x10] sm:$0xff]  ;;  %v98_v19 = vld [vmem:[%s2089_s3 + $0x18] sm:$0xff]  ;;  %v281_v44 = vsub.s32 0, %v1901_v40  ;;  %v302_v4 = vsub.s32 1, %v1901_v40 }
  0x4e   :  { %1454 = vmatprep.subr.bf16.mxu1 %v1681_v0  ;;  %1465 = vmatpush3.bf16.msra.mxu0 %v1849_v12  ;;  %v123_v20 = vld [vmem:[#allocation5] sm:$0xff]  ;;  %v1876_v21 = vpack.c.bf16 %v98_v19, %v97_v18  ;;  %v103_v22 = vld [vmem:[#allocation7] sm:$0xff]  ;;  %v104_v23 = vld [vmem:[#allocation7 + $0x8] sm:$0xff]  ;;  %v307_v7 = vsub.s32 2, %v1901_v40  ;;  %v466_v18 = vsub.s32 3, %v1901_v40 }
  0x4f   :  { %1466 = vmatprep.subr.bf16.mxu0 %v1681_v0  ;;  %v1886_v24 = vpack.c.bf16 %v104_v23, %v103_v22  ;;  %v105_v25 = vld [vmem:[#allocation7 + $0x10] sm:$0xff]  ;;  %v106_v26 = vld [vmem:[#allocation7 + $0x18] sm:$0xff]  ;;  %v1906_v42 = vld [vmem:[%s2094_s8] sm:$0xff] }
  0x50   :  { %v1890_v29 = vpack.c.bf16 %v106_v26, %v105_v25  ;;  %v1918_v9 = vrot.slane %v1906_v42, %v302_v4  ;;  %v113_v37 = vld [vmem:[%s2093_s7 + $0x10] sm:$0xff] }
  0x51   :  { %1456 = vmatpush3.bf16.msra.mxu1 %v1847_v11 }
  0x52   :  { %1457 = vmatprep.subr.bf16.mxu1 %v1681_v0  ;;  %1468 = vmatpush3.bf16.msra.mxu0 %v1859_v15 }
  0x53   :  { %1475 = vmatprep.subr.bf16.mxu0 %v1681_v0 }
  0x54   :  { %1312 = vmatmul.mubr.msk.f32.vlgmr.msra.gmra.mrb[0].mxu1 %vm124_vm1, %v122_v16 }
  0x55   :  { %1459 = vmatpush3.bf16.msra.mxu1 %v1863_v17  ;;  %1322 = vmatprep.mubr.msk.f32.mxu1 %vm1682_vm0, %v1683_v1 }
  0x56   :  { %1334 = vmatmul.mubr.msk.f32.vlgmr.msra.gmra.mrb[0].mxu0 %vm124_vm1, %v123_v20  ;;  %1460 = vmatprep.subr.bf16.mxu1 %v1681_v0 }
  0x57   :  { %1355 = vmatprep.mubr.msk.f32.mxu0 %vm1682_vm0, %v1683_v1 }
  0x59   :  { %1462 = vmatpush3.bf16.msra.mxu1 %v1876_v21 }
  0x5a   :  { %1469 = vmatprep.subr.bf16.mxu1 %v1681_v0 }
 0x127   :  { %v194_v27 = vpop.f32.mrb[0].mxu1 }
 0x128   :  { %v1313_v28 = vpop.f32.mrb[1].mxu1  ;;  %1323 = vmatmul.mubr.msk.f32.vlgmr.msra.gmra.mrb[2].mxu1 %vm124_vm1, %v194_v27 }
 0x129   :  { %1471 = vmatpush3.bf16.msra.mxu1 %v1886_v24  ;;  %v379_v30 = vpop.f32.mrb[0].mxu0  ;;  %1344 = vmatprep.mubr.msk.f32.mxu1 %vm1682_vm0, %v1683_v1  ;;  %v107_v28 = vld [vmem:[#allocation8] sm:$0xff] }
 0x12a   :  { %1472 = vmatprep.subr.bf16.mxu1 %v1681_v0  ;;  %v1335_v31 = vpop.f32.mrb[1].mxu0 }
 0x12d   :  { %1474 = vmatpush3.bf16.msra.mxu1 %v1890_v29 }
 0x12e   :  { %1481 = vmatprep.subr.bf16.mxu1 %v1681_v0 }
 0x130   :  { %1345 = vmatmul.mubr.msk.f32.vlgmr.msra.gmra.mrb[4].mxu1 %vm124_vm1, %v379_v30  ;;  %v108_v30 = vld [vmem:[#allocation8 + $0x8] sm:$0xff] }
 0x131   :  { %1374 = vmatprep.mubr.msk.f32.mxu1 %vm1682_vm0, %v1683_v1  ;;  %v1931_v31 = vpack.c.bf16 %v108_v30, %v107_v28 }
 0x133   :  { %1477 = vmatpush3.bf16.msra.mxu0 %v1931_v31 }
 0x134   :  { %1478 = vmatprep.subr.bf16.mxu0 %v1681_v0 }
 0x1fb   :  { %v267_v32 = vpop.f32.mrb[2].mxu1 }
 0x1fc   :  { %v271_v33 = vsel %vm124_vm1, %v267_v32, 0.0  ;;  %v1324_v34 = vpop.f32.mrb[3].mxu1  ;;  %v109_v32 = vld [vmem:[#allocation8 + $0x10] sm:$0xff] }
 0x1fd   :  { %v272_v35 = vrot.slane %v271_v33, 4 }
 0x1ff   :  { %v273_v36 = vadd.f32 %v272_v35, %v271_v33  ;;  %v110_v33 = vld [vmem:[#allocation8 + $0x18] sm:$0xff]  ;;  %v111_v35 = vld [vmem:[%s2093_s7] sm:$0xff] }
 0x200   :  { %v1935_v34 = vpack.c.bf16 %v110_v33, %v109_v32 }
 0x201   :  { %v274_v38 = vrot.slane %v273_v36, 2 }
 0x202   :  { %1480 = vmatpush3.bf16.msra.mxu0 %v1935_v34 }
 0x203   :  { %v275_v39 = vadd.f32 %v274_v38, %v273_v36  ;;  %v452_v51 = vpop.f32.mrb[4].mxu1  ;;  %1493 = vmatprep.subr.bf16.mxu0 %v1681_v0  ;;  %v112_v36 = vld [vmem:[%s2093_s7 + $0x8] sm:$0xff] }
 0x204   :  { %v1346_v52 = vpop.f32.mrb[5].mxu1  ;;  %v456_v53 = vsel %vm124_vm1, %v452_v51, 0.0  ;;  %v1948_v38 = vpack.c.bf16 %v112_v36, %v111_v35 }
 0x205   :  { %v276_v41 = vrot.slane %v275_v39, 1  ;;  %v457_v54 = vrot.slane %v456_v53, 4 }
 0x206   :  { %1483 = vmatpush3.bf16.msra.mxu1 %v1948_v38 }
 0x207   :  { %v277_v43 = vadd.f32 %v276_v41, %v275_v39  ;;  %v458_v57 = vadd.f32 %v457_v54, %v456_v53  ;;  %v114_v39 = vld [vmem:[%s2093_s7 + $0x18] sm:$0xff]  ;;  %1484 = vmatprep.subr.bf16.mxu1 %v1681_v0  ;;  %v486_v54 = vsub.s32 4, %v1901_v40 }
 0x208   :  { %v1954_v41 = vpack.c.bf16 %v114_v39, %v113_v37 }
 0x209   :  { %v278_v45 = vadd.f32 %v277_v43, %v1906_v42  ;;  %v459_v61 = vrot.slane %v458_v57, 2  ;;  %v115_v43 = vld [vmem:[%s2093_s7 + $0x20] sm:$0xff] }
 0x20a   :  { %1486 = vmatpush3.bf16.msra.mxu1 %v1954_v41 }
 0x20b   :  { %v282_v46 = vrot.slane %v278_v45, %v281_v44  ;;  %v460_v2 = vadd.f32 %v459_v61, %v458_v57  ;;  %v116_v45 = vld [vmem:[%s2093_s7 + $0x28] sm:$0xff]  ;;  %1487 = vmatprep.subr.bf16.mxu1 %v1681_v0  ;;  %v1972_v57 = vrot.slane %v1906_v42, %v486_v54 }
 0x20d   :  { %v283_v47 = vadd.f32 %v282_v46, %v122_v16  ;;  %v461_v3 = vrot.slane %v460_v2, 1  ;;  %v1922_v16 = vrot.slane %v1906_v42, %v307_v7  ;;  %v1964_v46 = vpack.c.bf16 %v116_v45, %v115_v43 }
 0x20f   :  { %v284_v48 = vsel %vm124_vm1, %v283_v47, 0.0  ;;  %v289_v49 = vmul.f32 %v283_v47, %v283_v47  ;;  %v462_v6 = vadd.f32 %v461_v3, %v460_v2  ;;  %1489 = vmatpush3.bf16.msra.mxu1 %v1964_v46 }
 0x210   :  { %285 = vadd.xlane.f32.xlu0 %v284_v48  ;;  %1490 = vmatprep.subr.bf16.mxu1 %v1681_v0 }
 0x211   :  { %v290_v50 = vsel %vm124_vm1, %v289_v49, 0.0  ;;  %v463_v13 = vadd.f32 %v462_v6, %v1906_v42 }
 0x213   :  { %v467_v22 = vrot.slane %v463_v13, %v466_v18 }
 0x214   :  { %291 = vadd.xlane.f32.xlu0 %v290_v50 }
 0x29d   :  { %v286_v55 = vpop.xlane.xlu0 %285 }
 0x29e   :  { %v288_v56 = vmul.f32 0.03125, %v286_v55  ;;  %v491_v55 = vsub.s32 5, %v1901_v40 }
 0x2a0   :  { %v294_v59 = vmul.f32 %v288_v56, %v288_v56  ;;  %v296_v8 = vsub.f32 %v283_v47, %v288_v56 }
 0x2a1   :  { %v292_v58 = vpop.xlane.xlu0 %291 }
 0x2a2   :  { %v293_v60 = vmul.f32 0.03125, %v292_v58 }
 0x2a4   :  { %v295_v62 = vsub.f32 %v293_v60, %v294_v59  ;;  %v1975_v60 = vrot.slane %v1906_v42, %v491_v55 }
 0x2a6   :  { %v297_v63 = vadd.f32 1e-05, %v295_v62 }
 0x2a8   :  { %1545 = vrsqrt.f32 %v297_v63  ;;  %v680_v63 = vld [vmem:[#allocation2 + $0x8] sm:$0xff] }
 0x2b2   :  { %v1546_v10 = vpop.eup %1545 }
 0x2b3   :  { %v299_v14 = vmul.f32 %v1546_v10, %v296_v8  ;;  %v682_v10 = vld [vmem:[#allocation5 + $0x8] sm:$0xff] }
 0x2b5   :  { %v304_v19 = vmul.f32 %v1918_v9, %v299_v14 }
 0x2b7   :  { %v309_v20 = vadd.f32 %v1922_v16, %v304_v19 }
 0x2b9   :  { %v468_v23 = vadd.f32 %v467_v22, %v309_v20 }
 0x2bb   :  { %v469_v25 = vsel %vm124_vm1, %v468_v23, 0.0  ;;  %v473_v26 = vmul.f32 %v468_v23, %v468_v23 }
 0x2bc   :  { %470 = vadd.xlane.f32.xlu1 %v469_v25 }
 0x2bd   :  { %v474_v27 = vsel %vm124_vm1, %v473_v26, 0.0 }
 0x2c0   :  { %475 = vadd.xlane.f32.xlu1 %v474_v27 }
 0x349   :  { %v471_v47 = vpop.xlane.xlu1 %470 }
 0x34a   :  { %v472_v48 = vmul.f32 0.03125, %v471_v47 }
 0x34c   :  { %v478_v50 = vmul.f32 %v472_v48, %v472_v48  ;;  %v480_v56 = vsub.f32 %v468_v23, %v472_v48 }
 0x34d   :  { %v476_v49 = vpop.xlane.xlu1 %475 }
 0x34e   :  { %v477_v51 = vmul.f32 0.03125, %v476_v49 }
 0x350   :  { %v479_v52 = vsub.f32 %v477_v51, %v478_v50  ;;  %v576_v50 = vsub.s32 6, %v1901_v40 }
 0x352   :  { %v481_v53 = vadd.f32 1e-05, %v479_v52  ;;  %v577_v54 = vrot.slane %v1906_v42, %v576_v50 }
 0x354   :  { %1547 = vrsqrt.f32 %v481_v53 }
 0x35e   :  { %v1548_v58 = vpop.eup %1547 }
 0x35f   :  { %v483_v59 = vmul.f32 %v1548_v58, %v480_v56 }
 0x361   :  { %v488_v61 = vmul.f32 %v1972_v57, %v483_v59 }
 0x363   :  { %v1979_v62 = vadd.f32 %v1975_v60, %v488_v61 }
 0x365   :  { %1356 = vmatmul.mubr.msk.f32.vlgmr.msra.gmra.mrb[2].mxu0 %vm124_vm1, %v1979_v62 }
 0x366   :  { %1495 = vmatpush3.bf16.msra.mxu0 %v1829_v5  ;;  %1385 = vmatprep.mubr.msk.f32.mxu0 %vm1682_vm0, %v1683_v1  ;;  %v117_v5 = vld [vmem:[%s2093_s7 + $0x30] sm:$0xff] }
 0x367   :  { %1496 = vmatprep.subr.bf16.mxu0 %v1681_v0 }
 0x36a   :  { %1498 = vmatpush3.bf16.msra.mxu0 %v1847_v11  ;;  %v118_v11 = vld [vmem:[%s2093_s7 + $0x38] sm:$0xff] }
 0x36b   :  { %1499 = vmatprep.subr.bf16.mxu0 %v1681_v0  ;;  %v1491_v2 = vpack.c.bf16 %v118_v11, %v117_v5 }
 0x36d   :  { %1386 = vmatmul.mubr.msk.f32.vlgmr.msra.gmra.mrb[4].mxu0 %vm124_vm1, %v680_v63  ;;  %1492 = vmatpush3.bf16.msra.mxu1 %v1491_v2 }
 0x36e   :  { %1501 = vmatpush3.bf16.msra.mxu0 %v1863_v17  ;;  %1396 = vmatprep.mubr.msk.f32.mxu0 %vm1682_vm0, %v1683_v1  ;;  %v2006_v17 = vld [vmem:[%s2095_s9] ss:$0 sm:$0xff] }
 0x36f   :  { %1502 = vmatprep.subr.bf16.mxu0 %v1681_v0  ;;  %1505 = vmatprep.subr.bf16.mxu1 %v1681_v0 }
 0x372   :  { %1504 = vmatpush3.bf16.msra.mxu0 %v1876_v21 }
 0x373   :  { %1511 = vmatprep.subr.bf16.mxu0 %v1681_v0 }
 0x438   :  { %v569_v21 = vpop.f32.mrb[2].mxu0 }
 0x439   :  { %v570_v3 = vadd.f32 %v2006_v17, %v569_v21  ;;  %v1357_v4 = vpop.f32.mrb[3].mxu0 }
 0x43b   :  { %v573_v6 = vmax.f32 %v570_v3, 0.0 }
 0x43d   :  { %1375 = vmatmul.mubr.msk.f32.vlgmr.msra.gmra.mrb[6].mxu1 %vm578_vm2, %v573_v6 }
 0x43e   :  { %1507 = vmatpush3.bf16.msra.mxu1 %v1849_v12  ;;  %1407 = vmatprep.mubr.msk.f32.mxu1 %vm1682_vm0, %v1683_v1 }
 0x43f   :  { %1508 = vmatprep.subr.bf16.mxu1 %v1681_v0 }
 0x440   :  { %v752_v7 = vpop.f32.mrb[4].mxu0 }
 0x441   :  { %1397 = vmatmul.mubr.msk.f32.vlgmr.msra.gmra.mrb[6].mxu0 %vm124_vm1, %v752_v7  ;;  %v1387_v8 = vpop.f32.mrb[5].mxu0 }
 0x442   :  { %1510 = vmatpush3.bf16.msra.mxu1 %v1859_v15  ;;  %1513 = vmatpush3.bf16.msra.mxu0 %v1886_v24 }
 0x443   :  { %1514 = vmatprep.subr.bf16.mxu0 %v1681_v0  ;;  %1418 = vmatprep.mubr.msk.f32.mxu0 %vm1682_vm0, %v1683_v1 }
 0x444   :  { %1517 = vmatprep.subr.bf16.mxu1 %v1681_v0 }
 0x445   :  { %1408 = vmatmul.mubr.msk.f32.vlgmr.msra.gmra.mrb[8].mxu1 %vm124_vm1, %v682_v10 }
 0x446   :  { %1516 = vmatpush3.bf16.msra.mxu0 %v1890_v29  ;;  %1519 = vmatpush3.bf16.msra.mxu1 %v1931_v31 }
 0x447   :  { %1520 = vmatprep.subr.bf16.mxu1 %v1681_v0  ;;  %1429 = vmatprep.mubr.msk.f32.mxu1 %vm1682_vm0, %v1683_v1 }
 0x448   :  { %1523 = vmatprep.subr.bf16.mxu0 %v1681_v0 }
 0x44a   :  { %1522 = vmatpush3.bf16.msra.mxu1 %v1935_v34 }
 0x510   :  { %v648_v12 = vpop.f32.mrb[6].mxu1 }
 0x511   :  { %v1376_v15 = vpop.f32.mrb[7].mxu1  ;;  %v649_v59 = vadd.f32 %v648_v12, %v577_v54 }
 0x513   :  { %v652_v11 = vadd.f32 %v649_v59, %v1979_v62 }
 0x514   :  { %v825_v24 = vpop.f32.mrb[6].mxu0 }
 0x515   :  { %v829_v13 = vsel %vm124_vm1, %v825_v24, 0.0  ;;  %v1398_v14 = vpop.f32.mrb[7].mxu0  ;;  %v657_v4 = vmul.f32 %v652_v11, %v652_v11 }
 0x516   :  { %v830_v19 = vrot.slane %v829_v13, 4 }
 0x517   :  { %v658_v6 = vsel %vm124_vm1, %v657_v4, 0.0 }
 0x518   :  { %v831_v20 = vadd.f32 %v830_v19, %v829_v13  ;;  %v928_v29 = vpop.f32.mrb[8].mxu1 }
 0x519   :  { %v1409_v22 = vpop.f32.mrb[9].mxu1  ;;  %1419 = vmatmul.mubr.msk.f32.vlgmr.msra.gmra.mrb[8].mxu0 %vm124_vm1, %v928_v29 }
 0x51a   :  { %v832_v23 = vrot.slane %v831_v20, 2  ;;  %1525 = vmatpush3.bf16.msra.mxu0 %v1948_v38  ;;  %1448 = vmatprep.mubr.msk.f32.mxu0 %vm1682_vm0, %v1683_v1 }
 0x51b   :  { %1526 = vmatprep.subr.bf16.mxu0 %v1681_v0 }
 0x51c   :  { %v833_v25 = vadd.f32 %v832_v23, %v831_v20 }
 0x51e   :  { %v834_v26 = vrot.slane %v833_v25, 1  ;;  %1528 = vmatpush3.bf16.msra.mxu0 %v1954_v41 }
 0x51f   :  { %1529 = vmatprep.subr.bf16.mxu0 %v1681_v0 }
 0x520   :  { %v835_v27 = vadd.f32 %v834_v26, %v833_v25  ;;  %v670_v26 = vsub.s32 7, %v1901_v40 }
 0x522   :  { %v836_v28 = vadd.f32 %v835_v27, %v1906_v42  ;;  %1531 = vmatpush3.bf16.msra.mxu0 %v1964_v46 }
 0x523   :  { %1532 = vmatprep.subr.bf16.mxu0 %v1681_v0 }
 0x524   :  { %v840_v30 = vrot.slane %v836_v28, %v281_v44 }
 0x526   :  { %v841_v31 = vadd.f32 %v840_v30, %v680_v63  ;;  %1534 = vmatpush3.bf16.msra.mxu0 %v1491_v2 }
 0x528   :  { %v842_v1 = vsel %vm124_vm1, %v841_v31, 0.0  ;;  %v846_v32 = vmul.f32 %v841_v31, %v841_v31 }
 0x529   :  { %843 = vadd.xlane.f32.xlu0 %v842_v1 }
 0x52a   :  { %v847_v33 = vsel %vm124_vm1, %v846_v32, 0.0 }
 0x52b   :  { %848 = vadd.xlane.f32.xlu1 %v847_v33  ;;  %v1228_v33 = vld [vmem:[%s2094_s8 + $0x8] ss:$0 sm:$0xff]  ;;  %s1684_s8 = smov [#allocation10]  }
 0x52c   :  { %s1207_s19 = sshll.u32 %s1684_s8, 4  ;;  %s1208_s19 = int_to_ptr.vmem [resolvable:$true] %s1207_s19 }
 0x52d   :  { %s1645_s4 = scalar_lea.vmem %s1208_s19, 256  ;;  %p1650_p5 = scmp.lt.s32.totalorder %s1208_s19, %s1208_s19 }
 0x52e   :  { %p1646_p4 = scmp.ne.s32.totalorder %s1208_s19, %s1645_s4  ;;  %p1651_p6 = scmp.lt.s32.totalorder %s1645_s4, %s1645_s4 }
 0x530   :  { %p1652_p7 = por %p1651_p6, %p1650_p5 }
 0x532   :  { %p1653_p8 = pnand %p1652_p7, %p1646_p4 }
 0x5b6   :  { %v844_v34 = vpop.xlane.xlu0 %843 }
 0x5b7   :  { %v845_v35 = vmul.f32 0.03125, %v844_v34 }
 0x5b8   :  { %v849_v36 = vpop.xlane.xlu1 %848 }
 0x5b9   :  { %v851_v37 = vmul.f32 %v845_v35, %v845_v35  ;;  %v850_v38 = vmul.f32 0.03125, %v849_v36  ;;  %v853_v48 = vsub.f32 %v841_v31, %v845_v35  ;;  %v671_v31 = vrot.slane %v1906_v42, %v670_v26 }
 0x5bb   :  { %v852_v39 = vsub.f32 %v850_v38, %v851_v37 }
 0x5bd   :  { %v854_v41 = vadd.f32 1e-05, %v852_v39 }
 0x5bf   :  { %1549 = vrsqrt.f32 %v854_v41 }
 0x5c9   :  { %v1550_v47 = vpop.eup %1549 }
 0x5ca   :  { %v856_v52 = vmul.f32 %v1550_v47, %v853_v48 }
 0x5cc   :  { %v857_v56 = vmul.f32 %v856_v52, %v1918_v9  ;;  %v653_v9 = vsel %vm124_vm1, %v652_v11, 0.0 }
 0x5ce   :  { %v858_v61 = vadd.f32 %v857_v56, %v1922_v16 }
 0x5ec   :  { %v1001_v0 = vpop.f32.mrb[8].mxu0 }
 0x5ed   :  { %v1005_v44 = vsel %vm124_vm1, %v1001_v0, 0.0  ;;  %v1420_v43 = vpop.f32.mrb[9].mxu0 }
 0x5ee   :  { %v1006_v45 = vrot.slane %v1005_v44, 4 }
 0x5f0   :  { %v1007_v46 = vadd.f32 %v1006_v45, %v1005_v44 }
 0x5f2   :  { %v1008_v49 = vrot.slane %v1007_v46, 2 }
 0x5f4   :  { %v1009_v51 = vadd.f32 %v1008_v49, %v1007_v46 }
 0x5f6   :  { %v1010_v53 = vrot.slane %v1009_v51, 1 }
 0x5f8   :  { %v1011_v55 = vadd.f32 %v1010_v53, %v1009_v51 }
 0x5fa   :  { %v1012_v58 = vadd.f32 %v1011_v55, %v1906_v42 }
 0x5fc   :  { %v1016_v63 = vrot.slane %v1012_v58, %v466_v18 }
 0x5fe   :  { %v1017_v5 = vadd.f32 %v1016_v63, %v858_v61 }
 0x600   :  { %v1018_v2 = vsel %vm124_vm1, %v1017_v5, 0.0  ;;  %v1022_v21 = vmul.f32 %v1017_v5, %v1017_v5 }
 0x601   :  { %1019 = vadd.xlane.f32.xlu0 %v1018_v2 }
 0x602   :  { %v1023_v3 = vsel %vm124_vm1, %v1022_v21, 0.0 }
 0x603   :  { %1024 = vadd.xlane.f32.xlu1 %v1023_v3 }
 0x605   :  { %654 = vadd.xlane.f32.xlu0 %v653_v9 }
 0x609   :  { %659 = vadd.xlane.f32.xlu0 %v658_v6 }
 0x68e   :  { %v1020_v16 = vpop.xlane.xlu0 %1019 }
 0x68f   :  { %v1021_v7 = vmul.f32 0.03125, %v1020_v16 }
 0x690   :  { %v1025_v18 = vpop.xlane.xlu1 %1024 }
 0x691   :  { %v1027_v8 = vmul.f32 %v1021_v7, %v1021_v7  ;;  %v1026_v10 = vmul.f32 0.03125, %v1025_v18  ;;  %v1029_v22 = vsub.f32 %v1017_v5, %v1021_v7 }
 0x692   :  { %v655_v62 = vpop.xlane.xlu0 %654 }
 0x693   :  { %v1028_v12 = vsub.f32 %v1026_v10, %v1027_v8  ;;  %v656_v15 = vmul.f32 0.03125, %v655_v62 }
 0x695   :  { %v1030_v24 = vadd.f32 1e-05, %v1028_v12  ;;  %v662_v14 = vmul.f32 %v656_v15, %v656_v15  ;;  %v664_v28 = vsub.f32 %v652_v11, %v656_v15 }
 0x696   :  { %v660_v13 = vpop.xlane.xlu0 %659 }
 0x697   :  { %1551 = vrsqrt.f32 %v1030_v24  ;;  %v661_v19 = vmul.f32 0.03125, %v660_v13 }
 0x699   :  { %v663_v20 = vsub.f32 %v661_v19, %v662_v14 }
 0x69b   :  { %v665_v29 = vadd.f32 1e-05, %v663_v20 }
 0x69d   :  { %1553 = vrsqrt.f32 %v665_v29 }
 0x6a1   :  { %v1552_v23 = vpop.eup %1551 }
 0x6a2   :  { %v1032_v25 = vmul.f32 %v1552_v23, %v1029_v22 }
 0x6a4   :  { %v1033_v27 = vmul.f32 %v1032_v25, %v1972_v57 }
 0x6a6   :  { %v1034_v30 = vadd.f32 %v1033_v27, %v1975_v60 }
 0x6a7   :  { %v1554_v1 = vpop.eup %1553 }
 0x6a8   :  { %1430 = vmatmul.mubr.msk.f32.vlgmr.msra.gmra.mrb[10].mxu1 %vm124_vm1, %v1034_v30  ;;  %v667_v32 = vmul.f32 %v1554_v1, %v664_v28 }
 0x6aa   :  { %v672_v34 = vmul.f32 %v671_v31, %v667_v32 }
 0x6ac   :  { %v677_v35 = vadd.f32 %v1228_v33, %v672_v34 }
 0x6ae   :  { %678 = vst.msk [vmem:[#allocation10] sm:$0xff] %vm124_vm1, %v677_v35 }
 0x77b   :  { %v1104_v40 = vpop.f32.mrb[10].mxu1 }
 0x77c   :  { %v1105_v57 = vadd.f32 %v2006_v17, %v1104_v40  ;;  %v1431_v36 = vpop.f32.mrb[11].mxu1 }
 0x77e   :  { %v1108_v37 = vmax.f32 %v1105_v57, 0.0 }
 0x780   :  { %1449 = vmatmul.mubr.msk.f32.vlgmr.msra.gmra.mrb[10].mxu0 %vm578_vm2, %v1108_v37 }
 0x853   :  { %v1178_v42 = vpop.f32.mrb[10].mxu0 }
 0x854   :  { %v1179_v60 = vadd.f32 %v1178_v42, %v577_v54  ;;  %v1450_v38 = vpop.f32.mrb[11].mxu0 }
 0x856   :  { %v1182_v39 = vadd.f32 %v1179_v60, %v1034_v30 }
 0x858   :  { %v1183_v41 = vsel %vm124_vm1, %v1182_v39, 0.0  ;;  %v1187_v0 = vmul.f32 %v1182_v39, %v1182_v39 }
 0x859   :  { %1184 = vadd.xlane.f32.xlu1 %v1183_v41 }
 0x85a   :  { %v1188_v44 = vsel %vm124_vm1, %v1187_v0, 0.0 }
 0x85d   :  { %1189 = vadd.xlane.f32.xlu1 %v1188_v44 }
 0x8e6   :  { %v1185_v43 = vpop.xlane.xlu1 %1184 }
 0x8e7   :  { %v1186_v45 = vmul.f32 0.03125, %v1185_v43 }
 0x8e9   :  { %v1192_v47 = vmul.f32 %v1186_v45, %v1186_v45  ;;  %v1194_v50 = vsub.f32 %v1182_v39, %v1186_v45 }
 0x8ea   :  { %v1190_v46 = vpop.xlane.xlu1 %1189 }
 0x8eb   :  { %v1191_v17 = vmul.f32 0.03125, %v1190_v46 }
 0x8ed   :  { %v1193_v48 = vsub.f32 %v1191_v17, %v1192_v47 }
 0x8ef   :  { %v1195_v49 = vadd.f32 1e-05, %v1193_v48 }
 0x8f1   :  { %1555 = vrsqrt.f32 %v1195_v49 }
 0x8fb   :  { %v1556_v51 = vpop.eup %1555 }
 0x8fc   :  { %v1197_v52 = vmul.f32 %v1556_v51, %v1194_v50 }
 0x8fe   :  { %v1198_v53 = vmul.f32 %v1197_v52, %v671_v31 }
 0x900   :  { %v1199_v54 = vadd.f32 %v1228_v33, %v1198_v53 }
 0x902   :  { %1201 = vst.msk [vmem:[#allocation10 + $0x8] sm:$0xff] %vm124_vm1, %v1199_v54 }
 0x903   :  { %1656 = shalt.err (!%p1653_p8)
}
 0x904   :  { %s1657_s20 = scalar_lea.hbm %s2096_s10, 256 }
 0x905   :  { %p1658_p9 = scmp.ne.s32.totalorder %s2096_s10, %s1657_s20  ;;  %p1661_p10 = scmp.lt.u32.totalorder %s1657_s20, %s2096_s10 }
 0x907   :  { %p1663_p11 = pnand %p1661_p10, %p1658_p9 }
 0x909   :  { %1666 = shalt.err (!%p1663_p11)
}
 0x90a   :  { %1213 = dma.vmem_to_hbm [thread:$0]  %s1208_s19, 256, %s2096_s10, [#allocation4], %s1677_s25, %s1677_s25, %s1678_s26  }
 0x90b   :  { %1673 = dma.done.wait [#allocation4], 256  }
 0x90c   :  { %1674 = vsyncadd [#allocation4], 4294967040 }
 0x90d   :  { %1217 = vsyncpa [#allocation3], 1 }
 0x90e   :  { %1218 = vsyncpa [#allocation6], 1 }
 0x90f   :  { %1219 = vsyncpa [#allocation9], 1 }
 0x910   :  { %1220 = vsyncpa [#allocation4], 1 }

</bundles_post_ra>
